<compile_context>
chip_gen: v6e
topology: v6e:2x2x1
jax: 0.10.0
libtpu: 0.0.40
codegen_flags: <defaults>
</compile_context>

<pallas_src>
import jax
import jax.numpy as jnp
from jax import lax
from jax.experimental import pallas as pl
from jax.experimental.pallas import tpu as pltpu

# ---- module hyper-parameters (small, but consistent with TransLayer(dim=...)) ----
DIM = 64                      # transformer dim (module uses 256; scaled down)
HEADS = 1
DIM_HEAD = DIM // 8           # 8
INNER = HEADS * DIM_HEAD      # 8
NUM_LANDMARKS = DIM // 2      # 32
PINV_ITERS = 6
RES_KERNEL = 33               # NystromAttention residual_conv_kernel default
CONV_PAD = RES_KERNEL // 2    # 16
LN_EPS = 1e-5                 # torch.nn.LayerNorm default eps
SCALE = DIM_HEAD ** -0.5

VMEM_LIMIT = 64 * 1024 * 1024  # raise toward 96-100 MiB on v5e/v6e at real sizes


def _softmax_fast(s):
    """Softmax with EUP approximate reciprocal (free slot)."""
    s = s - jnp.max(s, axis=-1, keepdims=True)
    e = jnp.exp(s)
    return e * pl.reciprocal(jnp.sum(e, axis=-1, keepdims=True), approx=True)


def _softmax_exact(s):
    """Exact-division softmax — used for attn2 which feeds the pinv iteration."""
    s = s - jnp.max(s, axis=-1, keepdims=True)
    e = jnp.exp(s)
    return e / jnp.sum(e, axis=-1, keepdims=True)


# --------------------------------------------------------------------------
# Kernel A1: LayerNorm + qkv projection, tiled / pipelined over the sequence.
# --------------------------------------------------------------------------
def ln_qkv_kernel(x_ref, ln_g_ref, ln_b_ref, w_qkv_ref, q_ref, k_ref, v_ref):
    x = x_ref[...]                                       # (B, TN, D) f32
    b, tn, d = x.shape

    # LayerNorm over the feature dim (biased variance, torch semantics), f32.
    mean = jnp.mean(x, axis=-1, keepdims=True)
    var = jnp.mean((x - mean) ** 2, axis=-1, keepdims=True)
    xn = (x - mean) * lax.rsqrt(var + LN_EPS)
    xn = xn * ln_g_ref[...] + ln_b_ref[...]

    # qkv projection: one 2-D MXU matmul, bf16 operands + f32 accumulation.
    qkv = jnp.dot(xn.reshape(b * tn, d).astype(jnp.bfloat16),
                  w_qkv_ref[...],                        # bf16 from wrapper
                  preferred_element_type=jnp.float32).reshape(b, tn, 3 * INNER)

    # attention scale is already folded into the q-columns of w_qkv.
    q_ref[...] = qkv[..., 0:INNER].astype(jnp.bfloat16)
    k_ref[...] = qkv[..., INNER:2 * INNER].astype(jnp.bfloat16)
    v_ref[...] = qkv[..., 2 * INNER:3 * INNER].astype(jnp.bfloat16)


# --------------------------------------------------------------------------
# Kernel A2: landmarks, attn2 / attn3, Moore-Penrose pinv (global batch max).
# --------------------------------------------------------------------------
def landmark_pinv_kernel(q_ref, k_ref, v_ref, kl_ref, z_ref, a3v_ref):
    q = q_ref[...].astype(jnp.float32)                   # (B, N, dh)
    k = k_ref[...].astype(jnp.float32)
    v = v_ref[...].astype(jnp.float32)
    b, n, dh = q.shape
    m = NUM_LANDMARKS
    l = n // m

    # landmarks: mean over groups of l consecutive tokens.
    q_l = jnp.mean(q.reshape(b, m, l, dh), axis=2)       # (B, m, dh)
    k_l = jnp.mean(k.reshape(b, m, l, dh), axis=2)       # (B, m, dh)
    kl_ref[...] = k_l.astype(kl_ref.dtype)

    sim2 = jnp.einsum('bid,bjd->bij', q_l, k_l, preferred_element_type=jnp.float32)
    sim3 = jnp.einsum('bid,bjd->bij', q_l, k, preferred_element_type=jnp.float32)
    attn2 = _softmax_exact(sim2)                         # exact: feeds pinv
    attn3 = _softmax_fast(sim3)

    # Moore-Penrose iterative pseudo-inverse of attn2 (f32).
    ri = lax.broadcasted_iota(jnp.int32, (m, m), 0)
    ci = lax.broadcasted_iota(jnp.int32, (m, m), 1)
    eye = (ri == ci).astype(jnp.float32)
    # Hoist identity broadcasts out of the loop (JAX does not CSE broadcast_in_dim).
    eye_b = jnp.broadcast_to(eye, (b, m, m))
    eye7 = 7.0 * eye_b
    eye13 = 13.0 * eye_b
    eye15 = 15.0 * eye_b

    abs_a = jnp.abs(attn2)
    col = jnp.sum(abs_a, axis=-1)                        # (B, m)
    row = jnp.sum(abs_a, axis=-2)                        # (B, m)
    # torch.max(col)/torch.max(row) are GLOBAL maxima across the whole batch.
    z = jnp.swapaxes(attn2, -1, -2) / (jnp.max(col) * jnp.max(row))
    for _ in range(PINV_ITERS):
        xz = jnp.einsum('bij,bjk->bik', attn2, z, preferred_element_type=jnp.float32)
        t = eye7 - xz
        t = eye15 - jnp.einsum('bij,bjk->bik', xz, t, preferred_element_type=jnp.float32)
        t = eye13 - jnp.einsum('bij,bjk->bik', xz, t, preferred_element_type=jnp.float32)
        z = 0.25 * jnp.einsum('bij,bjk->bik', z, t, preferred_element_type=jnp.float32)
    z_ref[...] = z

    # attn3 @ v (full-sequence contraction, tiny output (B, m, dh)).
    a3v_ref[...] = jnp.einsum('bij,bjd->bid', attn3, v,
                              preferred_element_type=jnp.float32)


# --------------------------------------------------------------------------
# Kernel B: per-sequence-tile attention combine + banded conv + out proj.
# --------------------------------------------------------------------------
def attn_out_kernel(x_ref, q_ref, band_ref, vslab_ref, kl_ref, z_ref, a3v_ref,
                    w_out_ref, b_out_ref, o_ref):
    x = x_ref[...]                                       # (B, TN, D) f32
    b, tn, d = x.shape

    # attn1 = softmax(q @ k_l^T): bf16 operands, f32 accumulation.
    sim1 = jnp.einsum('bid,bjd->bij', q_ref[...], kl_ref[...],
                      preferred_element_type=jnp.float32)            # (B, TN, m)
    attn1 = _softmax_fast(sim1)

    a12 = jnp.einsum('bij,bjk->bik', attn1, z_ref[...],
                     preferred_element_type=jnp.float32)             # (B, TN, m)
    out = jnp.einsum('bij,bjd->bid', a12, a3v_ref[...],
                     preferred_element_type=jnp.float32)             # (B, TN, dh)

    # 33-tap depthwise residual conv over the sequence dim as ONE banded
    # (Toeplitz) 2-D MXU matmul: band(TN, TN+32) @ v_halo(TN+32, B*dh).
    conv2 = jnp.dot(band_ref[...], vslab_ref[0],
                    preferred_element_type=jnp.float32)              # (TN, B*dh)
    conv = jnp.transpose(conv2.reshape(tn, b, INNER), (1, 0, 2))     # (B, TN, dh)
    out = out + conv

    # merge heads (heads == 1) + output projection: one 2-D bf16 matmul.
    y = jnp.dot(out.reshape(b * tn, INNER).astype(jnp.bfloat16),
                w_out_ref[...],
                preferred_element_type=jnp.float32).reshape(b, tn, d)

    # Dropout in to_out is identity at inference; TransLayer residual.
    o_ref[...] = x + y + b_out_ref[...]


# --------------------------------------------------------------------------
# Wrapper helpers (precomputed once per forward; depend only on w_conv / TN).
# --------------------------------------------------------------------------
def _build_conv_band(w_conv, tile_n):
    """Tile-invariant Toeplitz band B[r, j] = w[j - r] for 0 <= j - r < 33."""
    band_w = tile_n + 2 * CONV_PAD
    r = jnp.arange(tile_n)[:, None]
    jb = jnp.arange(band_w)[None, :]
    tap = jb - r
    band = jnp.where((tap >= 0) & (tap < RES_KERNEL),
                     w_conv[jnp.clip(tap, 0, RES_KERNEL - 1)], 0.0)
    return band.astype(jnp.bfloat16)                     # (TN, TN+32)


def _build_v_slabs(v, tile_n):
    """Per-tile v halo slabs, shape (num_tiles, TN+32, B*dh), bf16."""
    b, n, dh = v.shape
    nt = n // tile_n
    band_w = tile_n + 2 * CONV_PAD
    vp = jnp.pad(v, ((0, 0), (CONV_PAD, CONV_PAD), (0, 0)))     # (B, N+32, dh)
    idx = jnp.arange(nt)[:, None] * tile_n + jnp.arange(band_w)[None, :]
    slabs = vp[:, idx, :]                                # (B, nt, band, dh)
    slabs = jnp.transpose(slabs, (1, 2, 0, 3))           # (nt, band, B, dh)
    return slabs.reshape(nt, band_w, b * dh)


# --------------------------------------------------------------------------
# Wrapper
# --------------------------------------------------------------------------
def translayer(x, params, tile_n=64):
    B, N, D = x.shape
    assert D == DIM
    m = NUM_LANDMARKS
    # TODO(synk): Nystrom padding/mask path for N % num_landmarks != 0 not implemented.
    assert N % m == 0, "choose N divisible by num_landmarks (no pad path)"
    TN = min(tile_n, N)
    assert N % TN == 0 and TN % 8 == 0
    nt = N // TN
    BAND = TN + 2 * CONV_PAD

    ln_g = params['ln_g'].reshape(1, 1, D)
    ln_b = params['ln_b'].reshape(1, 1, D)
    b_out = params['b_out'].reshape(1, 1, D)
    w_qkv = params['w_qkv'].astype(jnp.bfloat16)          # bf16 MXU operands
    w_out = params['w_out'].astype(jnp.bfloat16)

    # ---------------- kernel A1: LayerNorm + qkv (tiled, pipelined) ----------------
    q, k, v = pl.pallas_call(
        ln_qkv_kernel,
        out_shape=tuple(jax.ShapeDtypeStruct((B, N, INNER), jnp.bfloat16)
                        for _ in range(3)),
        grid_spec=pltpu.PrefetchScalarGridSpec(
            num_scalar_prefetch=0,
            grid=(nt,),
            in_specs=[
                pl.BlockSpec((B, TN, D), lambda i: (0, i, 0)),        # x tile
                pl.BlockSpec((1, 1, D), lambda i: (0, 0, 0)),         # ln weight
                pl.BlockSpec((1, 1, D), lambda i: (0, 0, 0)),         # ln bias
                pl.BlockSpec((D, 3 * INNER), lambda i: (0, 0)),       # w_qkv
            ],
            out_specs=tuple(pl.BlockSpec((B, TN, INNER), lambda i: (0, i, 0))
                            for _ in range(3)),
        ),
        compiler_params=pltpu.CompilerParams(
            dimension_semantics=("parallel",),
            vmem_limit_bytes=VMEM_LIMIT),
    )(x, ln_g, ln_b, w_qkv)

    # ---------------- kernel A2: landmarks / attn2 / attn3 / pinv (global) ----------------
    vspec = pl.BlockSpec(memory_space=pltpu.MemorySpace.VMEM)
    kl, z, a3v = pl.pallas_call(
        landmark_pinv_kernel,
        out_shape=(
            jax.ShapeDtypeStruct((B, m, INNER), jnp.bfloat16),   # k landmarks
            jax.ShapeDtypeStruct((B, m, m), jnp.float32),        # pinv(attn2)
            jax.ShapeDtypeStruct((B, m, INNER), jnp.float32),    # attn3 @ v
        ),
        in_specs=[vspec, vspec, vspec],
        out_specs=(vspec, vspec, vspec),
        compiler_params=pltpu.CompilerParams(vmem_limit_bytes=VMEM_LIMIT),
    )(q, k, v)

    # ---------------- banded conv operands (O(N*(TN+32)), not O(N^2)) ----------------
    band = _build_conv_band(params['w_conv'], TN)        # (TN, BAND) bf16
    v_slabs = _build_v_slabs(v, TN)                      # (nt, BAND, B*dh) bf16

    # ---------------- kernel B: tiled over the sequence ----------------
    out = pl.pallas_call(
        attn_out_kernel,
        out_shape=jax.ShapeDtypeStruct((B, N, D), jnp.float32),
        grid_spec=pltpu.PrefetchScalarGridSpec(
            num_scalar_prefetch=0,
            grid=(nt,),
            in_specs=[
                pl.BlockSpec((B, TN, D), lambda i: (0, i, 0)),        # x tile
                pl.BlockSpec((B, TN, INNER), lambda i: (0, i, 0)),    # q tile (bf16)
                pl.BlockSpec((TN, BAND), lambda i: (0, 0)),           # Toeplitz band
                pl.BlockSpec((1, BAND, B * INNER), lambda i: (i, 0, 0)),  # v halo slab
                pl.BlockSpec((B, m, INNER), lambda i: (0, 0, 0)),     # k landmarks
                pl.BlockSpec((B, m, m), lambda i: (0, 0, 0)),         # pinv(attn2)
                pl.BlockSpec((B, m, INNER), lambda i: (0, 0, 0)),     # attn3 @ v
                pl.BlockSpec((INNER, D), lambda i: (0, 0)),           # w_out (bf16)
                pl.BlockSpec((1, 1, D), lambda i: (0, 0, 0)),         # b_out
            ],
            out_specs=pl.BlockSpec((B, TN, D), lambda i: (0, i, 0)),
        ),
        compiler_params=pltpu.CompilerParams(
            dimension_semantics=("parallel",),
            vmem_limit_bytes=VMEM_LIMIT),
    )(x, q, band, v_slabs, kl, z, a3v, w_out, b_out)
    return out


def init_params(key):
    k1, k2, k3, k4 = jax.random.split(key, 4)
    w_qkv = 0.02 * jax.random.normal(k1, (DIM, 3 * INNER), jnp.float32)
    # Fold the attention scale (dim_head^-0.5) into the q columns of w_qkv.
    w_qkv = w_qkv.at[:, :INNER].multiply(SCALE)
    return {
        # nn.LayerNorm(dim): weight=1, bias=0
        'ln_g': jnp.ones((DIM,), jnp.float32),
        'ln_b': jnp.zeros((DIM,), jnp.float32),
        # to_qkv: Linear(dim, 3*inner, bias=False); stored as (in, out) = W^T
        'w_qkv': w_qkv,
        # to_out[0]: Linear(inner, dim); stored as (in, out) = W^T, plus bias
        'w_out': 0.02 * jax.random.normal(k2, (INNER, DIM), jnp.float32),
        'b_out': 0.01 * jax.random.normal(k3, (DIM,), jnp.float32),
        # res_conv: Conv2d weight (heads=1, 1, 33, 1) -> (33,) depthwise taps
        'w_conv': 0.1 * jax.random.normal(k4, (RES_KERNEL,), jnp.float32),
    }


if __name__ == "__main__":
    key = jax.random.PRNGKey(0)
    kx, kp = jax.random.split(key)

    B, N = 2, 128                      # N divisible by NUM_LANDMARKS (=32) and TN (=64)
    x = jax.random.normal(kx, (B, N, DIM), jnp.float32)
    params = init_params(kp)

    out = translayer(x, params)
    out = jax.block_until_ready(out)
    assert out.shape == (B, N, DIM)
    assert bool(jnp.all(jnp.isfinite(out)))
    print("KERNEL_OK")
</pallas_src>

<mosaic_0001>
module attributes {stable_mosaic.version = 11 : i64} {
  func.func @ln_qkv_kernel(%arg0: i32, %arg1: memref<2x64x64xf32, #tpu.memory_space<vmem>>, %arg2: memref<1x1x64xf32, #tpu.memory_space<vmem>>, %arg3: memref<1x1x64xf32, #tpu.memory_space<vmem>>, %arg4: memref<64x24xbf16, #tpu.memory_space<vmem>>, %arg5: memref<2x64x8xbf16, #tpu.memory_space<vmem>>, %arg6: memref<2x64x8xbf16, #tpu.memory_space<vmem>>, %arg7: memref<2x64x8xbf16, #tpu.memory_space<vmem>>) attributes {dimension_semantics = [#tpu.dimension_semantics<parallel>], iteration_bounds = array<i64: 2>, scalar_prefetch = 0 : i64, scratch_operands = 0 : i64, tpu.core_type = #tpu.core_type<tc>, window_params = [{transform_indices = @transform_0, window_bounds = array<i64: 2, 64, 64>}, {pipeline_mode = #tpu.pipeline_mode<synchronous>, transform_indices = @transform_1, window_bounds = array<i64: 1, 1, 64>}, {pipeline_mode = #tpu.pipeline_mode<synchronous>, transform_indices = @transform_2, window_bounds = array<i64: 1, 1, 64>}, {pipeline_mode = #tpu.pipeline_mode<synchronous>, transform_indices = @transform_3, window_bounds = array<i64: 64, 24>}, {transform_indices = @transform_4, window_bounds = array<i64: 2, 64, 8>}, {transform_indices = @transform_5, window_bounds = array<i64: 2, 64, 8>}, {transform_indices = @transform_6, window_bounds = array<i64: 2, 64, 8>}]} {
    %c0 = arith.constant 0 : index
    %c0_0 = arith.constant 0 : index
    %c0_1 = arith.constant 0 : index
    %0 = vector.load %arg1[%c0, %c0_0, %c0_1] : memref<2x64x64xf32, #tpu.memory_space<vmem>>, vector<2x64x64xf32>
    %cst = arith.constant dense<0.000000e+00> : vector<2x64xf32>
    %1 = vector.multi_reduction <add>, %0, %cst [2] : vector<2x64x64xf32> to vector<2x64xf32>
    %2 = vector.shape_cast %1 : vector<2x64xf32> to vector<2x64x1xf32>
    %cst_2 = arith.constant 6.400000e+01 : f32
    %3 = vector.broadcast %cst_2 : f32 to vector<2x64x1xf32>
    %4 = arith.divf %2, %3 : vector<2x64x1xf32>
    %5 = vector.broadcast %4 : vector<2x64x1xf32> to vector<2x64x64xf32>
    %6 = arith.subf %0, %5 : vector<2x64x64xf32>
    %7 = arith.mulf %6, %6 : vector<2x64x64xf32>
    %cst_3 = arith.constant dense<0.000000e+00> : vector<2x64xf32>
    %8 = vector.multi_reduction <add>, %7, %cst_3 [2] : vector<2x64x64xf32> to vector<2x64xf32>
    %9 = vector.shape_cast %8 : vector<2x64xf32> to vector<2x64x1xf32>
    %cst_4 = arith.constant 6.400000e+01 : f32
    %10 = vector.broadcast %cst_4 : f32 to vector<2x64x1xf32>
    %11 = arith.divf %9, %10 : vector<2x64x1xf32>
    %12 = vector.broadcast %4 : vector<2x64x1xf32> to vector<2x64x64xf32>
    %13 = arith.subf %0, %12 : vector<2x64x64xf32>
    %cst_5 = arith.constant 9.99999974E-6 : f32
    %14 = vector.broadcast %cst_5 : f32 to vector<2x64x1xf32>
    %15 = arith.addf %11, %14 : vector<2x64x1xf32>
    %16 = math.rsqrt %15 : vector<2x64x1xf32>
    %17 = vector.broadcast %16 : vector<2x64x1xf32> to vector<2x64x64xf32>
    %18 = arith.mulf %13, %17 : vector<2x64x64xf32>
    %c0_6 = arith.constant 0 : index
    %c0_7 = arith.constant 0 : index
    %c0_8 = arith.constant 0 : index
    %19 = vector.load %arg2[%c0_6, %c0_7, %c0_8] : memref<1x1x64xf32, #tpu.memory_space<vmem>>, vector<1x1x64xf32>
    %20 = vector.broadcast %19 : vector<1x1x64xf32> to vector<2x64x64xf32>
    %21 = arith.mulf %18, %20 : vector<2x64x64xf32>
    %c0_9 = arith.constant 0 : index
    %c0_10 = arith.constant 0 : index
    %c0_11 = arith.constant 0 : index
    %22 = vector.load %arg3[%c0_9, %c0_10, %c0_11] : memref<1x1x64xf32, #tpu.memory_space<vmem>>, vector<1x1x64xf32>
    %23 = vector.broadcast %22 : vector<1x1x64xf32> to vector<2x64x64xf32>
    %24 = arith.addf %21, %23 : vector<2x64x64xf32>
    %25 = vector.shape_cast %24 : vector<2x64x64xf32> to vector<128x64xf32>
    %26 = arith.truncf %25 : vector<128x64xf32> to vector<128x64xbf16>
    %c0_12 = arith.constant 0 : index
    %c0_13 = arith.constant 0 : index
    %27 = vector.load %arg4[%c0_12, %c0_13] : memref<64x24xbf16, #tpu.memory_space<vmem>>, vector<64x24xbf16>
    %cst_14 = arith.constant dense<0.000000e+00> : vector<128x24xf32>
    %28 = tpu.matmul %26, %27, %cst_14 {dimension_numbers = #tpu.dot_dimension_numbers<[1], [0], [0], [1], [0, 0, 1, 1], [], []>} : vector<128x64xbf16>, vector<64x24xbf16>, vector<128x24xf32> -> vector<128x24xf32>
    %29 = vector.shape_cast %28 : vector<128x24xf32> to vector<2x64x24xf32>
    %30 = vector.extract_strided_slice %29 {offsets = [0, 0, 0], sizes = [2, 64, 8], strides = [1, 1, 1]} : vector<2x64x24xf32> to vector<2x64x8xf32>
    %31 = arith.truncf %30 : vector<2x64x8xf32> to vector<2x64x8xbf16>
    %c0_15 = arith.constant 0 : index
    %c0_16 = arith.constant 0 : index
    %c0_17 = arith.constant 0 : index
    %32 = vector.load %arg5[%c0_15, %c0_16, %c0_17] : memref<2x64x8xbf16, #tpu.memory_space<vmem>>, vector<2x64x8xbf16>
    tpu.vector_store %arg5[%c0_15, %c0_16, %c0_17], %31 {strides = array<i32>} : memref<2x64x8xbf16, #tpu.memory_space<vmem>>, vector<2x64x8xbf16>,
    %33 = vector.extract_strided_slice %29 {offsets = [0, 0, 8], sizes = [2, 64, 8], strides = [1, 1, 1]} : vector<2x64x24xf32> to vector<2x64x8xf32>
    %34 = arith.truncf %33 : vector<2x64x8xf32> to vector<2x64x8xbf16>
    %c0_18 = arith.constant 0 : index
    %c0_19 = arith.constant 0 : index
    %c0_20 = arith.constant 0 : index
    %35 = vector.load %arg6[%c0_18, %c0_19, %c0_20] : memref<2x64x8xbf16, #tpu.memory_space<vmem>>, vector<2x64x8xbf16>
    tpu.vector_store %arg6[%c0_18, %c0_19, %c0_20], %34 {strides = array<i32>} : memref<2x64x8xbf16, #tpu.memory_space<vmem>>, vector<2x64x8xbf16>,
    %36 = vector.extract_strided_slice %29 {offsets = [0, 0, 16], sizes = [2, 64, 8], strides = [1, 1, 1]} : vector<2x64x24xf32> to vector<2x64x8xf32>
    %37 = arith.truncf %36 : vector<2x64x8xf32> to vector<2x64x8xbf16>
    %c0_21 = arith.constant 0 : index
    %c0_22 = arith.constant 0 : index
    %c0_23 = arith.constant 0 : index
    %38 = vector.load %arg7[%c0_21, %c0_22, %c0_23] : memref<2x64x8xbf16, #tpu.memory_space<vmem>>, vector<2x64x8xbf16>
    tpu.vector_store %arg7[%c0_21, %c0_22, %c0_23], %37 {strides = array<i32>} : memref<2x64x8xbf16, #tpu.memory_space<vmem>>, vector<2x64x8xbf16>,
    return
  }
  func.func @transform_0(%arg0: i32) -> (i32, i32, i32) {
    %c0_i32 = arith.constant 0 : i32
    %c0_i32_0 = arith.constant 0 : i32
    %c0_i32_1 = arith.constant 0 : i32
    return %c0_i32, %arg0, %c0_i32_0 : i32, i32, i32
  }
  func.func @transform_1(%arg0: i32) -> (i32, i32, i32) {
    %c0_i32 = arith.constant 0 : i32
    %c0_i32_0 = arith.constant 0 : i32
    %c0_i32_1 = arith.constant 0 : i32
    %c0_i32_2 = arith.constant 0 : i32
    return %c0_i32, %c0_i32_0, %c0_i32_1 : i32, i32, i32
  }
  func.func @transform_2(%arg0: i32) -> (i32, i32, i32) {
    %c0_i32 = arith.constant 0 : i32
    %c0_i32_0 = arith.constant 0 : i32
    %c0_i32_1 = arith.constant 0 : i32
    %c0_i32_2 = arith.constant 0 : i32
    return %c0_i32, %c0_i32_0, %c0_i32_1 : i32, i32, i32
  }
  func.func @transform_3(%arg0: i32) -> (i32, i32) {
    %c0_i32 = arith.constant 0 : i32
    %c0_i32_0 = arith.constant 0 : i32
    %c0_i32_1 = arith.constant 0 : i32
    return %c0_i32, %c0_i32_0 : i32, i32
  }
  func.func @transform_4(%arg0: i32) -> (i32, i32, i32) {
    %c0_i32 = arith.constant 0 : i32
    %c0_i32_0 = arith.constant 0 : i32
    %c0_i32_1 = arith.constant 0 : i32
    return %c0_i32, %arg0, %c0_i32_0 : i32, i32, i32
  }
  func.func @transform_5(%arg0: i32) -> (i32, i32, i32) {
    %c0_i32 = arith.constant 0 : i32
    %c0_i32_0 = arith.constant 0 : i32
    %c0_i32_1 = arith.constant 0 : i32
    return %c0_i32, %arg0, %c0_i32_0 : i32, i32, i32
  }
  func.func @transform_6(%arg0: i32) -> (i32, i32, i32) {
    %c0_i32 = arith.constant 0 : i32
    %c0_i32_0 = arith.constant 0 : i32
    %c0_i32_1 = arith.constant 0 : i32
    return %c0_i32, %arg0, %c0_i32_0 : i32, i32, i32
  }
}

</mosaic_0001>

<bundles_post_ra>
// kernel: tpu_custom_call.1
= control target key start
LH: loop header
LB: loop body
LE: loop exit
PB: predicated region body
PF: predicated region fallthrough
CT: control target
= control target key end

     0   :  { %s1687_s21 = smov 0   ;;  %s1689_s22 = smov 0   ;;  %s2176_s0 = inlined_call_operand.vmem [shape: f32[2,128,64], index: 0, kind: input, shape index: {}]   ;;  %s2177_s1 = inlined_call_operand.vmem [shape: f32[1,1,64], index: 1, kind: input, shape index: {}]   ;;  %s2178_s2 = inlined_call_operand.vmem [shape: f32[1,1,64], index: 2, kind: input, shape index: {}]   ;;  %s2179_s3 = inlined_call_operand.vmem [shape: bf16[64,24], index: 3, kind: input, shape index: {}]   ;;  %s2180_s4 = inlined_call_operand.vmem [shape: bf16[2,128,8], index: 4, kind: output, shape index: {0}]   ;;  %s2181_s5 = inlined_call_operand.vmem [shape: bf16[2,128,8], index: 5, kind: output, shape index: {1}]   ;;  %s2182_s6 = inlined_call_operand.vmem [shape: bf16[2,128,8], index: 6, kind: output, shape index: {2}]  }
   0x1   :  { %s1691_s23 = smov 0  }
   0x2 LB: > { %s1703_s24 = sadd.s32 4294967295, %s1648_s23   ;;  %s1706_s25 = sadd.s32 1, %s1648_s23   ;;  %s1648_s23 = sphi %s1691_s23, %s2186_s23   ;;  %s1644_s22 = sphi %s1689_s22, %s2185_s22   ;;  %s1640_s21 = sphi %s1687_s21, %s2184_s21  }
   0x3   : > { %s21_s26 = ssub.s32 %s1648_s23, %s1706_s25  ;;  %s24_s27 = sadd.s32 1, %s1644_s22 }
   0x4   : > { %p22_p0 = scmp.eq.s32.totalorder %s21_s26, 0  ;;  %p31_p1 = scmp.ne.s32.totalorder %s1644_s22, %s1640_s21 }
   0x5   : > { %p32_p2 = scmp.eq.s32.totalorder %s1648_s23, 0  ;;  %p124_p3 = scmp.eq.s32.totalorder %s1703_s24, 1 }
   0x6   : > { %s1716_s28 = scalar_select %p22_p0, %s1644_s22, %s24_s27  }
   0x7   : > { %p33_p4 = por %p32_p2, %p31_p1  ;;  %p1718_p5 = por %p124_p3, %p31_p1 }
   0x8   : > { %p1450_p6 = scmp.ge.s32.totalorder %s1648_s23, 2 }
   0xa   : > { %207 = sbr.rel (%p1450_p6) target bundleno = 27 (0x1b), region = 28 }
   0xf   : > { %210 = sbr.rel (!%p33_p4) target bundleno = 27 (0x1b), region = 32  ;;  %s212_s30 = sand.u32 (%p33_p4), 1, %s1644_s22  }
  0x10   : > { %s1500_s7 = sshll.u32 (%p33_p4), %s1648_s23, 6  ;;  %s1451_s8 = sshll.u32 (%p33_p4), %s212_s30, 7 }
  0x11   : > { %s1728_s11 = scalar_lea.vmem (%p33_p4), %s2176_s0, %s1500_s7  ;;  %s214_s12 = scalar_lea.vmem (%p33_p4), [#allocation2], %s1451_s8 }
  0x12   : > { %v276_v0 = vld [vmem:[%s1728_s11] sm:$0xff] (%p33_p4)  ;;  %v278_v1 = vld [vmem:[%s1728_s11 + $0x8] sm:$0xff] (%p33_p4)  ;;  %v280_v2 = vld [vmem:[%s1728_s11 + $0x10] sm:$0xff] (%p33_p4) }
  0x13   : > { %277 = vst [vmem:[%s214_s12] sm:$0xff] (%p33_p4), %v276_v0  ;;  %279 = vst [vmem:[%s214_s12 + $0x8] sm:$0xff] (%p33_p4), %v278_v1  ;;  %v282_v3 = vld [vmem:[%s1728_s11 + $0x18] sm:$0xff] (%p33_p4)  ;;  %v284_v4 = vld [vmem:[%s1728_s11 + $0x20] sm:$0xff] (%p33_p4) }
  0x14   : > { %281 = vst [vmem:[%s214_s12 + $0x10] sm:$0xff] %v280_v2  ;;  %v286_v5 = vld [vmem:[%s1728_s11 + $0x28] sm:$0xff]  ;;  %283 = vst [vmem:[%s214_s12 + $0x18] sm:$0xff] %v282_v3  ;;  %v288_v6 = vld [vmem:[%s1728_s11 + $0x30] sm:$0xff] }
  0x15   : > { %285 = vst [vmem:[%s214_s12 + $0x20] sm:$0xff] %v284_v4  ;;  %287 = vst [vmem:[%s214_s12 + $0x28] sm:$0xff] %v286_v5  ;;  %v290_v7 = vld [vmem:[%s1728_s11 + $0x38] sm:$0xff]  ;;  %v292_v8 = vld [vmem:[%s1728_s11 + $0x80] sm:$0xff] }
  0x16   : > { %289 = vst [vmem:[%s214_s12 + $0x30] sm:$0xff] %v288_v6  ;;  %291 = vst [vmem:[%s214_s12 + $0x38] sm:$0xff] %v290_v7  ;;  %v294_v9 = vld [vmem:[%s1728_s11 + $0x88] sm:$0xff]  ;;  %v296_v10 = vld [vmem:[%s1728_s11 + $0x90] sm:$0xff] }
  0x17   : > { %293 = vst [vmem:[%s214_s12 + $0x40] sm:$0xff] %v292_v8  ;;  %v298_v11 = vld [vmem:[%s1728_s11 + $0x98] sm:$0xff]  ;;  %295 = vst [vmem:[%s214_s12 + $0x48] sm:$0xff] %v294_v9  ;;  %v300_v12 = vld [vmem:[%s1728_s11 + $0xa0] sm:$0xff] }
  0x18   : > { %297 = vst [vmem:[%s214_s12 + $0x50] sm:$0xff] %v296_v10  ;;  %299 = vst [vmem:[%s214_s12 + $0x58] sm:$0xff] %v298_v11  ;;  %v302_v13 = vld [vmem:[%s1728_s11 + $0xa8] sm:$0xff]  ;;  %v304_v14 = vld [vmem:[%s1728_s11 + $0xb0] sm:$0xff] }
  0x19   : > { %301 = vst [vmem:[%s214_s12 + $0x60] sm:$0xff] %v300_v12  ;;  %303 = vst [vmem:[%s214_s12 + $0x68] sm:$0xff] %v302_v13  ;;  %v306_v15 = vld [vmem:[%s1728_s11 + $0xb8] sm:$0xff] }
  0x1a   : > { %305 = vst [vmem:[%s214_s12 + $0x70] sm:$0xff] %v304_v14  ;;  %307 = vst [vmem:[%s214_s12 + $0x78] sm:$0xff] %v306_v15 }
  0x1b PF: > { %p1454_p7 = scmp.ge.s32.totalorder %s1648_s23, 1  ;;  %p312_p8 = scmp.lt.s32.totalorder %s1648_s23, 3 }
  0x1d   : > { %p313_p9 = pnand %p1454_p7, %p312_p8 }
  0x1e   : > { %s319_s13 = sand.u32 (!%p313_p9), 1, %s1640_s21   ;;  %s1650_s12 = smov (!%p313_p9), 120  }
  0x1f   : > { %316 = sbr.rel (%p313_p9) target bundleno = 746 (0x2ea), region = 70  ;;  %s1455_s14 = sshll.u32 (!%p313_p9), %s319_s13, 7 }
  0x20   : > { %s1751_s15 = scalar_lea.vmem (!%p313_p9), [#allocation2], %s1455_s14  ;;  %s1985_s10 = sshll.u32 (!%p313_p9), %s319_s13, 6 }
  0x21   : > { %s1988_s11 = scalar_lea.vmem (!%p313_p9), [#allocation3], %s1985_s10  ;;  %s1651_s21 = smov (!%p313_p9), 112  }
  0x22   : > { %s2055_s13 = scalar_lea.vmem (!%p313_p9), [#allocation4], %s1985_s10  ;;  %s2066_s14 = scalar_lea.vmem (!%p313_p9), [#allocation5], %s1985_s10 }
  0x24   : > { %vm376_vm0 = vcmask 523264   ;;  %v360_v16 = vld [vmem:[%s1751_s15] sm:$0xff]  ;;  %v361_v18 = vld [vmem:[%s1751_s15 + $0x8] sm:$0xff]  ;;  %v362_v24 = vld [vmem:[%s1751_s15 + $0x10] sm:$0xff]  ;;  %vm857_vm1 = vcmask 60416  }
  0x25   : > { %v368_v17 = vld [vmem:[%s1751_s15 + $0x40] sm:$0xff]  ;;  %v377_v19 = vsel %vm376_vm0, %v360_v16, 0.0  ;;  %v369_v21 = vld [vmem:[%s1751_s15 + $0x48] sm:$0xff]  ;;  %v380_v22 = vsel %vm376_vm0, %v361_v18, 0.0  ;;  %v363_v25 = vld [vmem:[%s1751_s15 + $0x18] sm:$0xff]  ;;  %v383_v26 = vsel %vm376_vm0, %v362_v24, 0.0 }
  0x26   : > { %v401_v20 = vsel %vm376_vm0, %v368_v17, 0.0  ;;  %378 = vadd.xlane.f32.xlu0 %v377_v19  ;;  %v404_v23 = vsel %vm376_vm0, %v369_v21, 0.0  ;;  %v386_v27 = vsel %vm376_vm0, %v363_v25, 0.0  ;;  %v1766_v28 = vld [vmem:[%s1751_s15 + $0x50] sm:$0xff]  ;;  %v1769_v29 = vld [vmem:[%s1751_s15 + $0x58] sm:$0xff]  ;;  %v1776_v32 = vld [vmem:[%s1751_s15 + $0x20] sm:$0xff] }
  0x27   : > { %402 = vadd.xlane.f32.xlu1 %v401_v20  ;;  %v407_v30 = vsel %vm376_vm0, %v1766_v28, 0.0  ;;  %v410_v31 = vsel %vm376_vm0, %v1769_v29, 0.0  ;;  %v1779_v33 = vld [vmem:[%s1751_s15 + $0x28] sm:$0xff]  ;;  %v389_v34 = vsel %vm376_vm0, %v1776_v32, 0.0  ;;  %v1786_v36 = vld [vmem:[%s1751_s15 + $0x60] sm:$0xff]  ;;  %v1796_v40 = vld [vmem:[%s1751_s15 + $0x30] sm:$0xff] }
  0x28   : > { %v392_v35 = vsel %vm376_vm0, %v1779_v33, 0.0  ;;  %v1789_v37 = vld [vmem:[%s1751_s15 + $0x68] sm:$0xff]  ;;  %v413_v38 = vsel %vm376_vm0, %v1786_v36, 0.0  ;;  %v1799_v41 = vld [vmem:[%s1751_s15 + $0x38] sm:$0xff]  ;;  %v395_v42 = vsel %vm376_vm0, %v1796_v40, 0.0  ;;  %v1806_v44 = vld [vmem:[%s1751_s15 + $0x70] sm:$0xff] }
  0x29   : > { %v416_v39 = vsel %vm376_vm0, %v1789_v37, 0.0  ;;  %v398_v43 = vsel %vm376_vm0, %v1799_v41, 0.0  ;;  %v1809_v45 = vld [vmem:[%s1751_s15 + $0x78] sm:$0xff]  ;;  %v419_v46 = vsel %vm376_vm0, %v1806_v44, 0.0  ;;  %s1517_s15 = sshll.u32 (%p1718_p5), %s1703_s24, 5 }
  0x2a   : > { %381 = vadd.xlane.f32.xlu0 %v380_v22  ;;  %v422_v47 = vsel %vm376_vm0, %v1809_v45, 0.0  ;;  %s1019_s18 = scalar_lea.vmem (%p1718_p5), %s2180_s4, %s1517_s15 }
  0x2b   : > { %405 = vadd.xlane.f32.xlu1 %v404_v23 }
  0x2e   : > { %384 = vadd.xlane.f32.xlu0 %v383_v26 }
  0x2f   : > { %387 = vadd.xlane.f32.xlu1 %v386_v27 }
  0x32   : > { %408 = vadd.xlane.f32.xlu0 %v407_v30 }
  0x33   : > { %411 = vadd.xlane.f32.xlu1 %v410_v31 }
  0x36   : > { %390 = vadd.xlane.f32.xlu0 %v389_v34 }
  0x37   : > { %393 = vadd.xlane.f32.xlu1 %v392_v35 }
  0x3a   : > { %414 = vadd.xlane.f32.xlu0 %v413_v38 }
  0x3b   : > { %417 = vadd.xlane.f32.xlu1 %v416_v39 }
  0x3e   : > { %396 = vadd.xlane.f32.xlu0 %v395_v42 }
  0x3f   : > { %399 = vadd.xlane.f32.xlu1 %v398_v43 }
  0x42   : > { %420 = vadd.xlane.f32.xlu0 %v419_v46 }
  0x43   : > { %423 = vadd.xlane.f32.xlu1 %v422_v47 }
  0xaf   : > { %v379_v48 = vpop.xlane.xlu0 %378 }
  0xb0   : > { %v403_v49 = vpop.xlane.xlu1 %402  ;;  %v426_v50 = vmul.f32 0.015625, %v379_v48 }
  0xb1   : > { %v434_v51 = vmul.f32 0.015625, %v403_v49 }
  0xb2   : > { %v1815_v52 = vsub.f32 %v360_v16, %v426_v50 }
  0xb3   : > { %v1817_v53 = vsub.f32 %v368_v17, %v434_v51  ;;  %v382_v54 = vpop.xlane.xlu0 %381 }
  0xb4   : > { %v406_v55 = vpop.xlane.xlu1 %405  ;;  %v427_v56 = vmul.f32 0.015625, %v382_v54  ;;  %v458_v58 = vmul.f32 %v1815_v52, %v1815_v52 }
  0xb5   : > { %v435_v57 = vmul.f32 0.015625, %v406_v55  ;;  %v466_v59 = vmul.f32 %v1817_v53, %v1817_v53 }
  0xb6   : > { %v1823_v60 = vsub.f32 %v361_v18, %v427_v56  ;;  %v474_v62 = vsel %vm376_vm0, %v458_v58, 0.0 }
  0xb7   : > { %v1825_v61 = vsub.f32 %v369_v21, %v435_v57  ;;  %475 = vadd.xlane.f32.xlu0 %v474_v62  ;;  %v385_v63 = vpop.xlane.xlu0 %384  ;;  %v498_v1 = vsel %vm376_vm0, %v466_v59, 0.0 }
  0xb8   : > { %v388_v0 = vpop.xlane.xlu1 %387  ;;  %v428_v2 = vmul.f32 0.015625, %v385_v63  ;;  %v459_v4 = vmul.f32 %v1823_v60, %v1823_v60 }
  0xb9   : > { %v429_v3 = vmul.f32 0.015625, %v388_v0  ;;  %v467_v5 = vmul.f32 %v1825_v61, %v1825_v61 }
  0xba   : > { %v1833_v6 = vsub.f32 %v362_v24, %v428_v2  ;;  %v477_v8 = vsel %vm376_vm0, %v459_v4, 0.0 }
  0xbb   : > { %v1835_v7 = vsub.f32 %v363_v25, %v429_v3  ;;  %499 = vadd.xlane.f32.xlu0 %v498_v1  ;;  %478 = vadd.xlane.f32.xlu1 %v477_v8  ;;  %v409_v9 = vpop.xlane.xlu0 %408  ;;  %v501_v11 = vsel %vm376_vm0, %v467_v5, 0.0  ;;  %v1591_v5 = vld [vmem:[%s2179_s3 + $0x10] sm:$0xff]   ;;  %v1592_v8 = vld [vmem:[%s2179_s3 + $0x8] sm:$0xff]  }
  0xbc   : > { %v412_v10 = vpop.xlane.xlu1 %411  ;;  %v436_v12 = vmul.f32 0.015625, %v409_v9  ;;  %v460_v14 = vmul.f32 %v1833_v6, %v1833_v6  ;;  %v1593_v9 = vld [vmem:[%s2179_s3] sm:$0xff]  }
  0xbd   : > { %v437_v13 = vmul.f32 0.015625, %v412_v10  ;;  %v461_v15 = vmul.f32 %v1835_v7, %v1835_v7 }
  0xbe   : > { %v1844_v16 = vsub.f32 %v1766_v28, %v436_v12  ;;  %v480_v18 = vsel %vm376_vm0, %v460_v14, 0.0 }
  0xbf   : > { %v1847_v17 = vsub.f32 %v1769_v29, %v437_v13  ;;  %502 = vadd.xlane.f32.xlu1 %v501_v11  ;;  %481 = vadd.xlane.f32.xlu0 %v480_v18  ;;  %v391_v19 = vpop.xlane.xlu0 %390  ;;  %v483_v21 = vsel %vm376_vm0, %v461_v15, 0.0 }
  0xc0   : > { %v394_v20 = vpop.xlane.xlu1 %393  ;;  %v430_v22 = vmul.f32 0.015625, %v391_v19  ;;  %v468_v24 = vmul.f32 %v1844_v16, %v1844_v16 }
  0xc1   : > { %v431_v23 = vmul.f32 0.015625, %v394_v20  ;;  %v469_v25 = vmul.f32 %v1847_v17, %v1847_v17 }
  0xc2   : > { %v1856_v26 = vsub.f32 %v1776_v32, %v430_v22  ;;  %v504_v28 = vsel %vm376_vm0, %v468_v24, 0.0 }
  0xc3   : > { %v1859_v27 = vsub.f32 %v1779_v33, %v431_v23  ;;  %484 = vadd.xlane.f32.xlu1 %v483_v21  ;;  %505 = vadd.xlane.f32.xlu0 %v504_v28  ;;  %v415_v29 = vpop.xlane.xlu0 %414  ;;  %v507_v31 = vsel %vm376_vm0, %v469_v25, 0.0 }
  0xc4   : > { %v418_v30 = vpop.xlane.xlu1 %417  ;;  %v438_v34 = vmul.f32 0.015625, %v415_v29  ;;  %v462_v38 = vmul.f32 %v1856_v26, %v1856_v26 }
  0xc5   : > { %v439_v35 = vmul.f32 0.015625, %v418_v30  ;;  %v463_v32 = vmul.f32 %v1859_v27, %v1859_v27 }
  0xc6   : > { %v1868_v39 = vsub.f32 %v1786_v36, %v438_v34  ;;  %v486_v42 = vsel %vm376_vm0, %v462_v38, 0.0 }
  0xc7   : > { %v1871_v33 = vsub.f32 %v1789_v37, %v439_v35  ;;  %508 = vadd.xlane.f32.xlu1 %v507_v31  ;;  %487 = vadd.xlane.f32.xlu0 %v486_v42  ;;  %v397_v43 = vpop.xlane.xlu0 %396  ;;  %v489_v47 = vsel %vm376_vm0, %v463_v32, 0.0 }
  0xc8   : > { %v400_v46 = vpop.xlane.xlu1 %399  ;;  %v432_v48 = vmul.f32 0.015625, %v397_v43  ;;  %v470_v50 = vmul.f32 %v1868_v39, %v1868_v39 }
  0xc9   : > { %v433_v49 = vmul.f32 0.015625, %v400_v46  ;;  %v471_v36 = vmul.f32 %v1871_v33, %v1871_v33 }
  0xca   : > { %v1880_v51 = vsub.f32 %v1796_v40, %v432_v48  ;;  %v510_v54 = vsel %vm376_vm0, %v470_v50, 0.0 }
  0xcb   : > { %v1883_v37 = vsub.f32 %v1799_v41, %v433_v49  ;;  %490 = vadd.xlane.f32.xlu1 %v489_v47  ;;  %511 = vadd.xlane.f32.xlu0 %v510_v54  ;;  %v421_v55 = vpop.xlane.xlu0 %420  ;;  %v513_v57 = vsel %vm376_vm0, %v471_v36, 0.0  ;;  %v1921_v36 = vld [vmem:[%s2177_s1] ss:$0 sm:$0xff] }
  0xcc   : > { %v424_v56 = vpop.xlane.xlu1 %423  ;;  %v440_v58 = vmul.f32 0.015625, %v421_v55  ;;  %v464_v62 = vmul.f32 %v1880_v51, %v1880_v51 }
  0xcd   : > { %v441_v59 = vmul.f32 0.015625, %v424_v56  ;;  %v465_v40 = vmul.f32 %v1883_v37, %v1883_v37 }
  0xce   : > { %v1892_v63 = vsub.f32 %v1806_v44, %v440_v58  ;;  %v492_v0 = vsel %vm376_vm0, %v464_v62, 0.0 }
  0xcf   : > { %v1895_v41 = vsub.f32 %v1809_v45, %v441_v59  ;;  %514 = vadd.xlane.f32.xlu1 %v513_v57  ;;  %493 = vadd.xlane.f32.xlu0 %v492_v0  ;;  %v495_v1 = vsel %vm376_vm0, %v465_v40, 0.0  ;;  %v1590_v45 = vld [vmem:[%s2179_s3 + $0x18] sm:$0xff]  }
  0xd0   : > { %v472_v2 = vmul.f32 %v1892_v63, %v1892_v63  ;;  %1532 = vmatprep.subr.bf16.mxu0 %v1590_v45  ;;  %1556 = vmatprep.subr.bf16.mxu1 %v1590_v45 }
  0xd1   : > { %v473_v3 = vmul.f32 %v1895_v41, %v1895_v41  ;;  %1533 = vmatpush3.bf16.msra.mxu0 %v1590_v45  ;;  %1560 = vmatpush3.bf16.msra.mxu1 %v1590_v45 }
  0xd2   : > { %v516_v4 = vsel %vm376_vm0, %v472_v2, 0.0  ;;  %1534 = vmatprep.subr.bf16.mxu0 %v1591_v5  ;;  %1557 = vmatprep.subr.bf16.mxu1 %v1591_v5 }
  0xd3   : > { %496 = vadd.xlane.f32.xlu1 %v495_v1  ;;  %517 = vadd.xlane.f32.xlu0 %v516_v4  ;;  %v519_v44 = vsel %vm376_vm0, %v473_v3, 0.0 }
  0xd5   : > { %1535 = vmatpush3.bf16.msra.mxu0 %v1591_v5  ;;  %1561 = vmatpush3.bf16.msra.mxu1 %v1591_v5 }
  0xd6   : > { %1536 = vmatprep.subr.bf16.mxu0 %v1592_v8  ;;  %1558 = vmatprep.subr.bf16.mxu1 %v1592_v8 }
  0xd7   : > { %520 = vadd.xlane.f32.xlu1 %v519_v44 }
  0xd9   : > { %1537 = vmatpush3.bf16.msra.mxu0 %v1592_v8  ;;  %1562 = vmatpush3.bf16.msra.mxu1 %v1592_v8 }
  0xda   : > { %1538 = vmatprep.subr.bf16.mxu0 %v1593_v9  ;;  %1559 = vmatprep.subr.bf16.mxu1 %v1593_v9 }
  0xdd   : > { %1539 = vmatpush3.bf16.msra.mxu0 %v1593_v9  ;;  %1563 = vmatpush3.bf16.msra.mxu1 %v1593_v9 }
 0x140   : > { %v476_v10 = vpop.xlane.xlu0 %475 }
 0x141   : > { %v522_v11 = vmul.f32 0.015625, %v476_v10 }
 0x143   : > { %v538_v12 = vadd.f32 1e-05, %v522_v11 }
 0x144   : > { %v479_v13 = vpop.xlane.xlu1 %478  ;;  %v500_v14 = vpop.xlane.xlu0 %499 }
 0x145   : > { %1594 = vrsqrt.f32 %v538_v12  ;;  %v523_v15 = vmul.f32 0.015625, %v479_v13  ;;  %v530_v18 = vmul.f32 0.015625, %v500_v14 }
 0x147   : > { %v539_v19 = vadd.f32 1e-05, %v523_v15  ;;  %v546_v20 = vadd.f32 1e-05, %v530_v18 }
 0x148   : > { %v503_v21 = vpop.xlane.xlu1 %502  ;;  %v482_v22 = vpop.xlane.xlu0 %481 }
 0x149   : > { %1596 = vrsqrt.f32 %v539_v19  ;;  %v531_v23 = vmul.f32 0.015625, %v503_v21  ;;  %v524_v24 = vmul.f32 0.015625, %v482_v22 }
 0x14a   : > { %1598 = vrsqrt.f32 %v546_v20 }
 0x14b   : > { %v547_v25 = vadd.f32 1e-05, %v531_v23  ;;  %v540_v28 = vadd.f32 1e-05, %v524_v24 }
 0x14c   : > { %v485_v29 = vpop.xlane.xlu1 %484  ;;  %v506_v30 = vpop.xlane.xlu0 %505 }
 0x14d   : > { %1600 = vrsqrt.f32 %v547_v25  ;;  %v525_v31 = vmul.f32 0.015625, %v485_v29  ;;  %v532_v34 = vmul.f32 0.015625, %v506_v30 }
 0x14e   : > { %1602 = vrsqrt.f32 %v540_v28 }
 0x14f   : > { %v541_v35 = vadd.f32 1e-05, %v525_v31  ;;  %v548_v38 = vadd.f32 1e-05, %v532_v34 }
 0x150   : > { %v509_v32 = vpop.xlane.xlu1 %508  ;;  %v488_v42 = vpop.xlane.xlu0 %487 }
 0x151   : > { %1604 = vrsqrt.f32 %v541_v35  ;;  %v533_v43 = vmul.f32 0.015625, %v509_v32  ;;  %v526_v46 = vmul.f32 0.015625, %v488_v42 }
 0x152   : > { %v1595_v47 = vpop.eup %1594  ;;  %1606 = vrsqrt.f32 %v548_v38 }
 0x153   : > { %v549_v48 = vadd.f32 1e-05, %v533_v43  ;;  %v542_v49 = vadd.f32 1e-05, %v526_v46  ;;  %v570_v50 = vmul.f32 %v1595_v47, %v1815_v52  ;;  %v1928_v52 = vld [vmem:[%s2178_s2] ss:$0 sm:$0xff] }
 0x154   : > { %v491_v54 = vpop.xlane.xlu1 %490  ;;  %v512_v55 = vpop.xlane.xlu0 %511 }
 0x155   : > { %1608 = vrsqrt.f32 %v549_v48  ;;  %v527_v56 = vmul.f32 0.015625, %v491_v54  ;;  %v534_v57 = vmul.f32 0.015625, %v512_v55  ;;  %v593_v59 = vmul.f32 %v1921_v36, %v570_v50 }
 0x156   : > { %v1597_v58 = vpop.eup %1596  ;;  %1610 = vrsqrt.f32 %v542_v49 }
 0x157   : > { %v1599_v62 = vpop.eup %1598  ;;  %v543_v40 = vadd.f32 1e-05, %v527_v56  ;;  %v550_v0 = vadd.f32 1e-05, %v534_v57  ;;  %v571_v1 = vmul.f32 %v1597_v58, %v1823_v60  ;;  %v616_v9 = vadd.f32 %v1928_v52, %v593_v59 }
 0x158   : > { %v515_v2 = vpop.xlane.xlu1 %514  ;;  %v494_v3 = vpop.xlane.xlu0 %493  ;;  %v578_v4 = vmul.f32 %v1599_v62, %v1817_v53 }
 0x159   : > { %1612 = vrsqrt.f32 %v543_v40  ;;  %v535_v44 = vmul.f32 0.015625, %v515_v2  ;;  %v528_v45 = vmul.f32 0.015625, %v494_v3  ;;  %v594_v5 = vmul.f32 %v1921_v36, %v571_v1 }
 0x15a   : > { %v1601_v8 = vpop.eup %1600  ;;  %1614 = vrsqrt.f32 %v550_v0  ;;  %v601_v53 = vmul.f32 %v1921_v36, %v578_v4 }
 0x15b   : > { %v1603_v10 = vpop.eup %1602  ;;  %v551_v60 = vadd.f32 1e-05, %v535_v44  ;;  %v544_v11 = vadd.f32 1e-05, %v528_v45  ;;  %v617_v12 = vadd.f32 %v1928_v52, %v594_v5  ;;  %v579_v13 = vmul.f32 %v1601_v8, %v1825_v61 }
 0x15c   : > { %v497_v14 = vpop.xlane.xlu1 %496  ;;  %v518_v15 = vpop.xlane.xlu0 %517  ;;  %v572_v18 = vmul.f32 %v1603_v10, %v1833_v6  ;;  %v624_v6 = vadd.f32 %v1928_v52, %v601_v53 }
 0x15d   : > { %1616 = vrsqrt.f32 %v551_v60  ;;  %v529_v19 = vmul.f32 0.015625, %v497_v14  ;;  %v536_v20 = vmul.f32 0.015625, %v518_v15  ;;  %v632_v21 = vpack.c.bf16 %v617_v12, %v616_v9 }
 0x15e   : > { %v1605_v22 = vpop.eup %1604  ;;  %1618 = vrsqrt.f32 %v544_v11  ;;  %v602_v23 = vmul.f32 %v1921_v36, %v579_v13  ;;  %v595_v24 = vmul.f32 %v1921_v36, %v572_v18 }
 0x15f   : > { %v1607_v25 = vpop.eup %1606  ;;  %v545_v28 = vadd.f32 1e-05, %v529_v19  ;;  %v552_v29 = vadd.f32 1e-05, %v536_v20  ;;  %1540 = vmatprep.mubr.msk.bf16.mxu0 %vm376_vm0, %v632_v21  ;;  %v573_v61 = vmul.f32 %v1605_v22, %v1835_v7 }
 0x160   : > { %v521_v30 = vpop.xlane.xlu1 %520  ;;  %v625_v31 = vadd.f32 %v1928_v52, %v602_v23  ;;  %v580_v34 = vmul.f32 %v1607_v25, %v1844_v16  ;;  %v618_v43 = vadd.f32 %v1928_v52, %v595_v24 }
 0x161   : > { %1620 = vrsqrt.f32 %v545_v28  ;;  %v537_v35 = vmul.f32 0.015625, %v521_v30  ;;  %v596_v38 = vmul.f32 %v1921_v36, %v573_v61 }
 0x162   : > { %v1609_v32 = vpop.eup %1608  ;;  %1622 = vrsqrt.f32 %v552_v29  ;;  %v636_v42 = vpack.c.bf16 %v625_v31, %v624_v6  ;;  %v603_v49 = vmul.f32 %v1921_v36, %v580_v34 }
 0x163   : > { %v1611_v46 = vpop.eup %1610  ;;  %v553_v47 = vadd.f32 1e-05, %v537_v35  ;;  %v619_v7 = vadd.f32 %v1928_v52, %v596_v38  ;;  %v581_v48 = vmul.f32 %v1609_v32, %v1847_v17 }
 0x164   : > { %1548 = vmatprep.mubr.msk.bf16.mxu1 %vm376_vm0, %v636_v42  ;;  %v574_v16 = vmul.f32 %v1611_v46, %v1856_v26  ;;  %v626_v57 = vadd.f32 %v1928_v52, %v603_v49 }
 0x165   : > { %1624 = vrsqrt.f32 %v553_v47  ;;  %v633_v50 = vpack.c.bf16 %v619_v7, %v618_v43  ;;  %v604_v54 = vmul.f32 %v1921_v36, %v581_v48 }
 0x166   : > { %v1613_v55 = vpop.eup %1612  ;;  %v597_v59 = vmul.f32 %v1921_v36, %v574_v16 }
 0x167   : > { %v1615_v56 = vpop.eup %1614  ;;  %1541 = vmatmul.mubr.msk.bf16.vlgmr.msra.gmra.mxu0 %vm376_vm0, %v633_v50  ;;  %v627_v58 = vadd.f32 %v1928_v52, %v604_v54  ;;  %v575_v17 = vmul.f32 %v1613_v55, %v1859_v27 }
 0x168   : > { %v582_v62 = vmul.f32 %v1615_v56, %v1868_v39  ;;  %v620_v2 = vadd.f32 %v1928_v52, %v597_v59 }
 0x169   : > { %v637_v40 = vpack.c.bf16 %v627_v58, %v626_v57  ;;  %v598_v26 = vmul.f32 %v1921_v36, %v575_v17 }
 0x16a   : > { %v1617_v0 = vpop.eup %1616  ;;  %v605_v44 = vmul.f32 %v1921_v36, %v582_v62 }
 0x16b   : > { %v1619_v1 = vpop.eup %1618  ;;  %1549 = vmatmul.mubr.msk.bf16.vlgmr.msra.gmra.mxu1 %vm376_vm0, %v637_v40  ;;  %v621_v3 = vadd.f32 %v1928_v52, %v598_v26  ;;  %v583_v4 = vmul.f32 %v1617_v0, %v1871_v33 }
 0x16c   : > { %v576_v27 = vmul.f32 %v1619_v1, %v1880_v51  ;;  %v628_v9 = vadd.f32 %v1928_v52, %v605_v44 }
 0x16d   : > { %v634_v45 = vpack.c.bf16 %v621_v3, %v620_v2  ;;  %v606_v39 = vmul.f32 %v1921_v36, %v583_v4 }
 0x16e   : > { %v1621_v5 = vpop.eup %1620  ;;  %v599_v11 = vmul.f32 %v1921_v36, %v576_v27 }
 0x16f   : > { %v1623_v8 = vpop.eup %1622  ;;  %1544 = vmatprep.mubr.msk.bf16.mxu0 %vm376_vm0, %v634_v45  ;;  %v629_v10 = vadd.f32 %v1928_v52, %v606_v39  ;;  %v577_v60 = vmul.f32 %v1621_v5, %v1883_v37 }
 0x170   : > { %v584_v33 = vmul.f32 %v1623_v8, %v1892_v63  ;;  %v622_v14 = vadd.f32 %v1928_v52, %v599_v11 }
 0x171   : > { %v638_v12 = vpack.c.bf16 %v629_v10, %v628_v9  ;;  %v600_v51 = vmul.f32 %v1921_v36, %v577_v60 }
 0x172   : > { %v1625_v13 = vpop.eup %1624  ;;  %v607_v18 = vmul.f32 %v1921_v36, %v584_v33 }
 0x173   : > { %1552 = vmatprep.mubr.msk.bf16.mxu1 %vm376_vm0, %v638_v12  ;;  %v623_v15 = vadd.f32 %v1928_v52, %v600_v51  ;;  %v585_v53 = vmul.f32 %v1625_v13, %v1895_v41 }
 0x174   : > { %v630_v63 = vadd.f32 %v1928_v52, %v607_v18 }
 0x175   : > { %v635_v37 = vpack.c.bf16 %v623_v15, %v622_v14  ;;  %v608_v19 = vmul.f32 %v1921_v36, %v585_v53 }
 0x177   : > { %1545 = vmatmul.mubr.msk.bf16.gmra.mxu0 %vm376_vm0, %v635_v37  ;;  %v631_v20 = vadd.f32 %v1928_v52, %v608_v19 }
 0x179   : > { %v639_v21 = vpack.c.bf16 %v631_v20, %v630_v63 }
 0x17b   : > { %1553 = vmatmul.mubr.msk.bf16.gmra.mxu1 %vm376_vm0, %v639_v21 }
 0x227   : > { %v1542_v22 = vpop.f32.mrf.mxu0 }
 0x228   : > { %v1503_v41 = vpack.c.bf16 %v1542_v22, %v1542_v22 }
 0x229   : > { %v730_v23 = vpop.f32.mrf.mxu0 }
 0x22a   : > { %860 = vst.msk [vmem:[%s1988_s11 + $0x8] sm:$0xf] %vm857_vm1, %v1503_v41  ;;  %v1501_v36 = vpack.c.bf16 %v730_v23, %v730_v23  ;;  %878 = vrot.lane.b32.xlu1 %v1503_v41, %s1650_s12 }
 0x22b   : > { %v1543_v52 = vpop.f32.mrf.mxu0  ;;  %v1550_v24 = vpop.f32.mrf.mxu1 }
 0x22c   : > { %858 = vst.msk [vmem:[%s1988_s11] sm:$0xf] %vm857_vm1, %v1501_v36  ;;  %v1504_v25 = vpack.c.bf16 %v1543_v52, %v1543_v52  ;;  %v1511_v28 = vpack.c.bf16 %v1550_v24, %v1550_v24 }
 0x22d   : > { %v733_v29 = vpop.f32.mrf.mxu0  ;;  %v762_v61 = vpop.f32.mrf.mxu1 }
 0x22e   : > { %861 = vst.msk [vmem:[%s1988_s11 + $0xc] sm:$0xf] %vm857_vm1, %v1504_v25  ;;  %868 = vst.msk [vmem:[%s1988_s11 + $0x28] sm:$0xf] %vm857_vm1, %v1511_v28  ;;  %v1502_v30 = vpack.c.bf16 %v733_v29, %v733_v29  ;;  %v1509_v6 = vpack.c.bf16 %v762_v61, %v762_v61  ;;  %880 = vrot.lane.b32.xlu1 %v1504_v25, %s1650_s12  ;;  %894 = vrot.lane.b32.xlu0 %v1511_v28, %s1650_s12 }
 0x22f   : > { %v1551_v31 = vpop.f32.mrf.mxu1 }
 0x230   : > { %859 = vst.msk [vmem:[%s1988_s11 + $0x4] sm:$0xf] %vm857_vm1, %v1502_v30  ;;  %866 = vst.msk [vmem:[%s1988_s11 + $0x20] sm:$0xf] %vm857_vm1, %v1509_v6  ;;  %v1512_v34 = vpack.c.bf16 %v1551_v31, %v1551_v31 }
 0x231   : > { %v765_v35 = vpop.f32.mrf.mxu1 }
 0x232   : > { %869 = vst.msk [vmem:[%s1988_s11 + $0x2c] sm:$0xf] %vm857_vm1, %v1512_v34  ;;  %v1510_v38 = vpack.c.bf16 %v765_v35, %v765_v35  ;;  %942 = vrot.lane.b32.xlu0 %v1503_v41, %s1651_s21  ;;  %896 = vrot.lane.b32.xlu1 %v1512_v34, %s1650_s12 }
 0x234   : > { %867 = vst.msk [vmem:[%s1988_s11 + $0x24] sm:$0xf] %vm857_vm1, %v1510_v38 }
 0x235   : > { %v1040_v41 = vld [vmem:[%s1988_s11 + $0x8] sm:$0xff] (%p1718_p5)  }
 0x236   : > { %958 = vrot.lane.b32.xlu0 %v1511_v28, %s1651_s21  ;;  %944 = vrot.lane.b32.xlu1 %v1504_v25, %s1651_s21  ;;  %1041 = vst [vmem:[%s1019_s18 + $0x8] sm:$0xff] (%p1718_p5), %v1040_v41  }
 0x237   : > { %v1546_v32 = vpop.f32.mrf.mxu0  ;;  %v1036_v22 = vld [vmem:[%s1988_s11] sm:$0xff] (%p1718_p5)  }
 0x238   : > { %v1507_v42 = vpack.c.bf16 %v1546_v32, %v1546_v32  ;;  %1037 = vst [vmem:[%s1019_s18] sm:$0xff] (%p1718_p5), %v1036_v22  }
 0x239   : > { %v746_v43 = vpop.f32.mrf.mxu0  ;;  %v1056_v24 = vld [vmem:[%s1988_s11 + $0x28] sm:$0xff] (%p1718_p5)  }
 0x23a   : > { %864 = vst.msk [vmem:[%s1988_s11 + $0x18] sm:$0xf] %vm857_vm1, %v1507_v42  ;;  %v1505_v46 = vpack.c.bf16 %v746_v43, %v746_v43  ;;  %874 = vrot.lane.b32.xlu0 %v1501_v36, %s1650_s12  ;;  %960 = vrot.lane.b32.xlu1 %v1512_v34, %s1651_s21  ;;  %1057 = vst [vmem:[%s1019_s18 + $0x48] sm:$0xff] (%p1718_p5), %v1056_v24  }
 0x23b   : > { %v1547_v47 = vpop.f32.mrf.mxu0  ;;  %v1554_v7 = vpop.f32.mrf.mxu1  ;;  %v1052_v52 = vld [vmem:[%s1988_s11 + $0x20] sm:$0xff] (%p1718_p5)  }
 0x23c   : > { %862 = vst.msk [vmem:[%s1988_s11 + $0x10] sm:$0xf] %vm857_vm1, %v1505_v46  ;;  %v1508_v48 = vpack.c.bf16 %v1547_v47, %v1547_v47  ;;  %v1515_v49 = vpack.c.bf16 %v1554_v7, %v1554_v7  ;;  %1053 = vst [vmem:[%s1019_s18 + $0x40] sm:$0xff] (%p1718_p5), %v1052_v52  }
 0x23d   : > { %v749_v16 = vpop.f32.mrf.mxu0  ;;  %v778_v50 = vpop.f32.mrf.mxu1 }
 0x23e   : > { %865 = vst.msk [vmem:[%s1988_s11 + $0x1c] sm:$0xf] %vm857_vm1, %v1508_v48  ;;  %872 = vst.msk [vmem:[%s1988_s11 + $0x38] sm:$0xf] %vm857_vm1, %v1515_v49  ;;  %v1506_v54 = vpack.c.bf16 %v749_v16, %v749_v16  ;;  %v1513_v55 = vpack.c.bf16 %v778_v50, %v778_v50  ;;  %890 = vrot.lane.b32.xlu0 %v1509_v6, %s1650_s12  ;;  %876 = vrot.lane.b32.xlu1 %v1502_v30, %s1650_s12 }
 0x23f   : > { %v1555_v56 = vpop.f32.mrf.mxu1 }
 0x240   : > { %863 = vst.msk [vmem:[%s1988_s11 + $0x14] sm:$0xf] %vm857_vm1, %v1506_v54  ;;  %870 = vst.msk [vmem:[%s1988_s11 + $0x30] sm:$0xf] %vm857_vm1, %v1513_v55  ;;  %v1516_v57 = vpack.c.bf16 %v1555_v56, %v1555_v56 }
 0x241   : > { %v781_v58 = vpop.f32.mrf.mxu1 }
 0x242   : > { %873 = vst.msk [vmem:[%s1988_s11 + $0x3c] sm:$0xf] %vm857_vm1, %v1516_v57  ;;  %v1514_v17 = vpack.c.bf16 %v781_v58, %v781_v58  ;;  %938 = vrot.lane.b32.xlu0 %v1501_v36, %s1651_s21  ;;  %892 = vrot.lane.b32.xlu1 %v1510_v38, %s1650_s12 }
 0x244   : > { %871 = vst.msk [vmem:[%s1988_s11 + $0x34] sm:$0xf] %vm857_vm1, %v1514_v17 }
 0x245   : > { %v1048_v36 = vld [vmem:[%s1988_s11 + $0x18] sm:$0xff] (%p1718_p5)  }
 0x246   : > { %954 = vrot.lane.b32.xlu0 %v1509_v6, %s1651_s21  ;;  %940 = vrot.lane.b32.xlu1 %v1502_v30, %s1651_s21  ;;  %1049 = vst [vmem:[%s1019_s18 + $0x18] sm:$0xff] (%p1718_p5), %v1048_v36  }
 0x247   : > { %v1044_v23 = vld [vmem:[%s1988_s11 + $0x10] sm:$0xff] (%p1718_p5)  }
 0x248   : > { %1045 = vst [vmem:[%s1019_s18 + $0x10] sm:$0xff] (%p1718_p5), %v1044_v23  }
 0x249   : > { %v1064_v28 = vld [vmem:[%s1988_s11 + $0x38] sm:$0xff] (%p1718_p5)  }
 0x24a   : > { %956 = vrot.lane.b32.xlu1 %v1510_v38, %s1651_s21  ;;  %886 = vrot.lane.b32.xlu0 %v1507_v42, %s1650_s12  ;;  %1065 = vst [vmem:[%s1019_s18 + $0x58] sm:$0xff] (%p1718_p5), %v1064_v28  }
 0x24b   : > { %v1060_v25 = vld [vmem:[%s1988_s11 + $0x30] sm:$0xff] (%p1718_p5)  }
 0x24c   : > { %1061 = vst [vmem:[%s1019_s18 + $0x50] sm:$0xff] (%p1718_p5), %v1060_v25  }
 0x24e   : > { %888 = vrot.lane.b32.xlu1 %v1508_v48, %s1650_s12  ;;  %902 = vrot.lane.b32.xlu0 %v1515_v49, %s1650_s12 }
 0x252   : > { %950 = vrot.lane.b32.xlu0 %v1507_v42, %s1651_s21  ;;  %904 = vrot.lane.b32.xlu1 %v1516_v57, %s1650_s12 }
 0x256   : > { %882 = vrot.lane.b32.xlu0 %v1505_v46, %s1650_s12  ;;  %952 = vrot.lane.b32.xlu1 %v1508_v48, %s1651_s21 }
 0x25a   : > { %898 = vrot.lane.b32.xlu0 %v1513_v55, %s1650_s12  ;;  %884 = vrot.lane.b32.xlu1 %v1506_v54, %s1650_s12 }
 0x25e   : > { %946 = vrot.lane.b32.xlu0 %v1505_v46, %s1651_s21  ;;  %900 = vrot.lane.b32.xlu1 %v1514_v17, %s1650_s12 }
 0x262   : > { %962 = vrot.lane.b32.xlu0 %v1513_v55, %s1651_s21  ;;  %948 = vrot.lane.b32.xlu1 %v1506_v54, %s1651_s21 }
 0x266   : > { %966 = vrot.lane.b32.xlu0 %v1515_v49, %s1651_s21  ;;  %964 = vrot.lane.b32.xlu1 %v1514_v17, %s1651_s21 }
 0x26a   : > { %968 = vrot.lane.b32.xlu1 %v1516_v57, %s1651_s21 }
 0x29c   : > { %v879_v59 = vpop.permute.xlu1 %878 }
 0x29d   : > { %924 = vst.msk [vmem:[%s2055_s13 + $0x8] sm:$0xf] %vm857_vm1, %v879_v59 }
 0x2a0   : > { %v881_v62 = vpop.permute.xlu1 %880  ;;  %v895_v40 = vpop.permute.xlu0 %894 }
 0x2a1   : > { %925 = vst.msk [vmem:[%s2055_s13 + $0xc] sm:$0xf] %vm857_vm1, %v881_v62  ;;  %932 = vst.msk [vmem:[%s2055_s13 + $0x28] sm:$0xf] %vm857_vm1, %v895_v40 }
 0x2a4   : > { %v897_v26 = vpop.permute.xlu1 %896  ;;  %v943_v0 = vpop.permute.xlu0 %942 }
 0x2a5   : > { %933 = vst.msk [vmem:[%s2055_s13 + $0x2c] sm:$0xf] %vm857_vm1, %v897_v26  ;;  %988 = vst.msk [vmem:[%s2066_s14 + $0x8] sm:$0xf] %vm857_vm1, %v943_v0 }
 0x2a8   : > { %v945_v1 = vpop.permute.xlu1 %944  ;;  %v959_v2 = vpop.permute.xlu0 %958 }
 0x2a9   : > { %989 = vst.msk [vmem:[%s2066_s14 + $0xc] sm:$0xf] %vm857_vm1, %v945_v1  ;;  %996 = vst.msk [vmem:[%s2066_s14 + $0x28] sm:$0xf] %vm857_vm1, %v959_v2 }
 0x2ac   : > { %v961_v3 = vpop.permute.xlu1 %960  ;;  %v875_v4 = vpop.permute.xlu0 %874 }
 0x2ad   : > { %997 = vst.msk [vmem:[%s2066_s14 + $0x2c] sm:$0xf] %vm857_vm1, %v961_v3  ;;  %922 = vst.msk [vmem:[%s2055_s13] sm:$0xf] %vm857_vm1, %v875_v4 }
 0x2b0   : > { %v877_v44 = vpop.permute.xlu1 %876  ;;  %v891_v27 = vpop.permute.xlu0 %890 }
 0x2b1   : > { %923 = vst.msk [vmem:[%s2055_s13 + $0x4] sm:$0xf] %vm857_vm1, %v877_v44  ;;  %930 = vst.msk [vmem:[%s2055_s13 + $0x20] sm:$0xf] %vm857_vm1, %v891_v27 }
 0x2b4   : > { %v893_v45 = vpop.permute.xlu1 %892  ;;  %v939_v39 = vpop.permute.xlu0 %938 }
 0x2b5   : > { %931 = vst.msk [vmem:[%s2055_s13 + $0x24] sm:$0xf] %vm857_vm1, %v893_v45  ;;  %986 = vst.msk [vmem:[%s2066_s14] sm:$0xf] %vm857_vm1, %v939_v39 }
 0x2b8   : > { %v941_v5 = vpop.permute.xlu1 %940  ;;  %v955_v8 = vpop.permute.xlu0 %954 }
 0x2b9   : > { %987 = vst.msk [vmem:[%s2066_s14 + $0x4] sm:$0xf] %vm857_vm1, %v941_v5  ;;  %994 = vst.msk [vmem:[%s2066_s14 + $0x20] sm:$0xf] %vm857_vm1, %v955_v8 }
 0x2bc   : > { %v957_v9 = vpop.permute.xlu1 %956  ;;  %v887_v10 = vpop.permute.xlu0 %886 }
 0x2bd   : > { %995 = vst.msk [vmem:[%s2066_s14 + $0x24] sm:$0xf] %vm857_vm1, %v957_v9  ;;  %928 = vst.msk [vmem:[%s2055_s13 + $0x18] sm:$0xf] %vm857_vm1, %v887_v10 }
 0x2c0   : > { %v889_v60 = vpop.permute.xlu1 %888  ;;  %v903_v11 = vpop.permute.xlu0 %902 }
 0x2c1   : > { %929 = vst.msk [vmem:[%s2055_s13 + $0x1c] sm:$0xf] %vm857_vm1, %v889_v60  ;;  %936 = vst.msk [vmem:[%s2055_s13 + $0x38] sm:$0xf] %vm857_vm1, %v903_v11 }
 0x2c4   : > { %v905_v33 = vpop.permute.xlu1 %904  ;;  %v951_v12 = vpop.permute.xlu0 %950 }
 0x2c5   : > { %937 = vst.msk [vmem:[%s2055_s13 + $0x3c] sm:$0xf] %vm857_vm1, %v905_v33  ;;  %992 = vst.msk [vmem:[%s2066_s14 + $0x18] sm:$0xf] %vm857_vm1, %v951_v12 }
 0x2c8   : > { %v953_v51 = vpop.permute.xlu1 %952  ;;  %v883_v13 = vpop.permute.xlu0 %882 }
 0x2c9   : > { %993 = vst.msk [vmem:[%s2066_s14 + $0x1c] sm:$0xf] %vm857_vm1, %v953_v51  ;;  %926 = vst.msk [vmem:[%s2055_s13 + $0x10] sm:$0xf] %vm857_vm1, %v883_v13 }
 0x2cc   : > { %v885_v14 = vpop.permute.xlu1 %884  ;;  %v899_v15 = vpop.permute.xlu0 %898 }
 0x2cd   : > { %927 = vst.msk [vmem:[%s2055_s13 + $0x14] sm:$0xf] %vm857_vm1, %v885_v14  ;;  %934 = vst.msk [vmem:[%s2055_s13 + $0x30] sm:$0xf] %vm857_vm1, %v899_v15 }
 0x2d0   : > { %v901_v53 = vpop.permute.xlu1 %900  ;;  %v947_v18 = vpop.permute.xlu0 %946 }
 0x2d1   : > { %935 = vst.msk [vmem:[%s2055_s13 + $0x34] sm:$0xf] %vm857_vm1, %v901_v53  ;;  %990 = vst.msk [vmem:[%s2066_s14 + $0x10] sm:$0xf] %vm857_vm1, %v947_v18 }
 0x2d4   : > { %v949_v37 = vpop.permute.xlu1 %948  ;;  %v963_v19 = vpop.permute.xlu0 %962 }
 0x2d5   : > { %991 = vst.msk [vmem:[%s2066_s14 + $0x14] sm:$0xf] %vm857_vm1, %v949_v37  ;;  %998 = vst.msk [vmem:[%s2066_s14 + $0x30] sm:$0xf] %vm857_vm1, %v963_v19 }
 0x2d8   : > { %v965_v63 = vpop.permute.xlu1 %964  ;;  %v967_v20 = vpop.permute.xlu0 %966 }
 0x2d9   : > { %999 = vst.msk [vmem:[%s2066_s14 + $0x34] sm:$0xf] %vm857_vm1, %v965_v63  ;;  %1000 = vst.msk [vmem:[%s2066_s14 + $0x38] sm:$0xf] %vm857_vm1, %v967_v20  ;;  %1016 = sbr.rel (!%p1718_p5) target bundleno = 734 (0x2de), region = 78 }
 0x2dc   : > { %v969_v21 = vpop.permute.xlu1 %968 }
 0x2dd   : > { %1001 = vst.msk [vmem:[%s2066_s14 + $0x3c] sm:$0xf] %vm857_vm1, %v969_v21 }
 0x2de PF: > { %1123 = sbr.rel (!%p1718_p5) target bundleno = 740 (0x2e4), region = 119  ;;  %s1518_s19 = sshll.u32 (%p1718_p5), %s1703_s24, 5  ;;  %v1143_v29 = vld [vmem:[%s2055_s13] sm:$0xff] (%p1718_p5)   ;;  %v1147_v61 = vld [vmem:[%s2055_s13 + $0x8] sm:$0xff] (%p1718_p5)   ;;  %v1151_v30 = vld [vmem:[%s2055_s13 + $0x10] sm:$0xff] (%p1718_p5)  }
 0x2df   : > { %s1126_s26 = scalar_lea.vmem (%p1718_p5), %s2181_s5, %s1518_s19  ;;  %v1155_v6 = vld [vmem:[%s2055_s13 + $0x18] sm:$0xff] (%p1718_p5)   ;;  %v1159_v31 = vld [vmem:[%s2055_s13 + $0x20] sm:$0xff] (%p1718_p5)   ;;  %v1163_v34 = vld [vmem:[%s2055_s13 + $0x28] sm:$0xff] (%p1718_p5)  }
 0x2e0   : > { %1144 = vst [vmem:[%s1126_s26] sm:$0xff] (%p1718_p5), %v1143_v29   ;;  %1148 = vst [vmem:[%s1126_s26 + $0x8] sm:$0xff] (%p1718_p5), %v1147_v61   ;;  %v1167_v35 = vld [vmem:[%s2055_s13 + $0x30] sm:$0xff] (%p1718_p5)   ;;  %v1171_v38 = vld [vmem:[%s2055_s13 + $0x38] sm:$0xff] (%p1718_p5)  }
 0x2e1   : > { %1152 = vst [vmem:[%s1126_s26 + $0x10] sm:$0xff] (%p1718_p5), %v1151_v30   ;;  %1156 = vst [vmem:[%s1126_s26 + $0x18] sm:$0xff] (%p1718_p5), %v1155_v6  }
 0x2e2   : > { %1160 = vst [vmem:[%s1126_s26 + $0x40] sm:$0xff] (%p1718_p5), %v1159_v31   ;;  %1164 = vst [vmem:[%s1126_s26 + $0x48] sm:$0xff] (%p1718_p5), %v1163_v34  }
 0x2e3   : > { %1168 = vst [vmem:[%s1126_s26 + $0x50] sm:$0xff] %v1167_v35   ;;  %1172 = vst [vmem:[%s1126_s26 + $0x58] sm:$0xff] %v1171_v38  }
 0x2e4 PF: > { %1230 = sbr.rel (!%p1718_p5) target bundleno = 746 (0x2ea), region = 160  ;;  %s1519_s27 = sshll.u32 (%p1718_p5), %s1703_s24, 5  ;;  %v1250_v32 = vld [vmem:[%s2066_s14] sm:$0xff] (%p1718_p5)   ;;  %v1254_v42 = vld [vmem:[%s2066_s14 + $0x8] sm:$0xff] (%p1718_p5)   ;;  %v1258_v43 = vld [vmem:[%s2066_s14 + $0x10] sm:$0xff] (%p1718_p5)  }
 0x2e5   : > { %s1233_s8 = scalar_lea.vmem (%p1718_p5), %s2182_s6, %s1519_s27  ;;  %v1262_v46 = vld [vmem:[%s2066_s14 + $0x18] sm:$0xff] (%p1718_p5)   ;;  %v1266_v47 = vld [vmem:[%s2066_s14 + $0x20] sm:$0xff] (%p1718_p5)   ;;  %v1270_v7 = vld [vmem:[%s2066_s14 + $0x28] sm:$0xff] (%p1718_p5)  }
 0x2e6   : > { %1251 = vst [vmem:[%s1233_s8] sm:$0xff] (%p1718_p5), %v1250_v32   ;;  %1255 = vst [vmem:[%s1233_s8 + $0x8] sm:$0xff] (%p1718_p5), %v1254_v42   ;;  %v1274_v48 = vld [vmem:[%s2066_s14 + $0x30] sm:$0xff] (%p1718_p5)   ;;  %v1278_v49 = vld [vmem:[%s2066_s14 + $0x38] sm:$0xff] (%p1718_p5)  }
 0x2e7   : > { %1259 = vst [vmem:[%s1233_s8 + $0x10] sm:$0xff] (%p1718_p5), %v1258_v43   ;;  %1263 = vst [vmem:[%s1233_s8 + $0x18] sm:$0xff] (%p1718_p5), %v1262_v46  }
 0x2e8   : > { %1267 = vst [vmem:[%s1233_s8 + $0x40] sm:$0xff] (%p1718_p5), %v1266_v47   ;;  %1271 = vst [vmem:[%s1233_s8 + $0x48] sm:$0xff] (%p1718_p5), %v1270_v7  }
 0x2e9   : > { %1275 = vst [vmem:[%s1233_s8 + $0x50] sm:$0xff] %v1274_v48   ;;  %1279 = vst [vmem:[%s1233_s8 + $0x58] sm:$0xff] %v1278_v49  }
 0x2ea PF: > { %p14_p10 = scmp.ge.s32.totalorder %s1706_s25, 4   ;;  %s2184_s21 = smov %s1644_s22 }
 0x2eb   : > { %s2185_s22 = smov %s1716_s28  ;;  %s2186_s23 = smov %s1706_s25 }
 0x2ec   :  { %16 = sbr.rel (!%p14_p10) target bundleno = 2 (0x2), region = 256 }

</bundles_post_ra>
